<compile_context>
chip_gen: v7x
topology: tpu7x:2x2x1
jax: 0.10.0
libtpu: 0.0.40
codegen_flags: <defaults>
</compile_context>

<pallas_src>
import functools

import jax
import jax.numpy as jnp
from jax.experimental import pallas as pl
from jax.experimental.pallas import tpu as pltpu


def _round_up(x, m):
    return ((x + m - 1) // m) * m


def _gat_proj_kernel(h_ref, w_ref, was_ref, wad_ref,
                     wh_ref, fsrc_ref, fdst_ref, *, use_bf16):
    """Per-row-tile projection: Wh, f_src, f_dst (computed once per node).

    h_ref   : (Tr, F_in)          node-feature rows of this tile
    w_ref   : (F_in, HF_pad)      per-head projections, concatenated + zero-padded
    was_ref : (F_in, H)           folded W @ a_src per head
    wad_ref : (F_in, H)           folded W @ a_dst per head
    wh_ref  : (Tr, HF_pad) f32    projected features (dense lane stores)
    fsrc_ref: (Tr, H)      f32    source-side attention logits
    fdst_ref: (Tr, H)      f32    destination-side attention logits
    """
    h = h_ref[...]
    w = w_ref[...]
    if use_bf16:
        wh_ref[...] = jnp.dot(h.astype(jnp.bfloat16), w.astype(jnp.bfloat16),
                              preferred_element_type=jnp.float32)
    else:
        wh_ref[...] = jnp.dot(h, w, preferred_element_type=jnp.float32)
    fsrc_ref[...] = jnp.dot(h, was_ref[...], preferred_element_type=jnp.float32)
    fdst_ref[...] = jnp.dot(h, wad_ref[...], preferred_element_type=jnp.float32)


def _gat_attn_kernel(adj_ref, wh_ref, fsrc_ref, fdst_ref, out_ref, *,
                     alpha, apply_elu, f_out, n_heads, hf_pad, use_bf16):
    """Per query-row tile: masked softmax attention + neighborhood aggregation.

    adj_ref : (Tq, N_pad) int8     adjacency rows for this query tile
    wh_ref  : (N_pad, HF_pad) f32  projected features, all nodes (resident)
    fsrc_ref: (Tq, H) f32          source logits for this tile
    fdst_ref: (N_pad, H) f32       destination logits, all nodes (resident)
    out_ref : (Tq, HF_pad) f32     head-concatenated output (lane-padded)
    """
    adj_mask = adj_ref[...].astype(jnp.float32) > 0.0            # (Tq, N_pad)
    wh = wh_ref[...]                                             # (N_pad, HF_pad)
    fsrc = fsrc_ref[...]                                         # (Tq, H)
    fdst = fdst_ref[...]                                         # (N_pad, H)
    neg_big = jnp.float32(-9.0e15)
    tq = adj_mask.shape[0]

    cols = []
    for hd in range(n_heads):
        # e[i, j] = LeakyReLU(f_src[i] + f_dst[j])
        e = fsrc[:, hd:hd + 1] + jnp.transpose(fdst[:, hd:hd + 1])   # (Tq, N_pad)
        e = jnp.where(e > 0, e, alpha * e)
        masked = jnp.where(adj_mask, e, neg_big)
        m = jnp.max(masked, axis=1, keepdims=True)
        p = jnp.exp(masked - m)
        s = jnp.sum(p, axis=1, keepdims=True)
        attn = p * pl.reciprocal(s, approx=True)                 # EUP, not VPU divide
        wh_h = wh[:, hd * f_out:(hd + 1) * f_out]                # (N_pad, F_out)
        if use_bf16:
            hp = jnp.dot(attn.astype(jnp.bfloat16), wh_h.astype(jnp.bfloat16),
                         preferred_element_type=jnp.float32)
        else:
            hp = jnp.dot(attn, wh_h, preferred_element_type=jnp.float32)
        if apply_elu:
            hp = jnp.where(hp > 0, hp, jnp.exp(jnp.minimum(hp, 0.0)) - 1.0)
        cols.append(hp)

    hf = n_heads * f_out
    if hf_pad > hf:
        cols.append(jnp.zeros((tq, hf_pad - hf), jnp.float32))
    out_ref[...] = cols[0] if len(cols) == 1 else jnp.concatenate(cols, axis=1)


def gat_layer_fused(h, adj_i8, W_stack, a_stack, *, alpha, apply_elu,
                    tq=256, use_bf16_mxu=False):
    """All heads of one GraphAttentionLayer (eval mode), two pallas_calls.

    h       : (N, F_in) float32
    adj_i8  : (N, N) int8 (nonzero = edge)
    W_stack : (H, F_in, F_out)
    a_stack : (H, 2*F_out)
    returns : (N, H*F_out) float32 (heads concatenated along dim 1)
    """
    N, f_in = h.shape
    H, f_in_w, f_out = W_stack.shape
    assert f_in == f_in_w
    hf = H * f_out
    hf_pad = _round_up(hf, 128)

    # Fold the attention-vector halves into the input projection (tiny JAX glue):
    # f_src = h @ (W @ a_src), f_dst = h @ (W @ a_dst).
    a_src = a_stack[:, :f_out]                                   # (H, F_out)
    a_dst = a_stack[:, f_out:]                                   # (H, F_out)
    wa_src = jnp.einsum("hif,hf->ih", W_stack, a_src)            # (F_in, H)
    wa_dst = jnp.einsum("hif,hf->ih", W_stack, a_dst)            # (F_in, H)
    w_all = jnp.transpose(W_stack, (1, 0, 2)).reshape(f_in, hf)  # (F_in, H*F_out)
    if hf_pad > hf:
        # Zero-pad the projection columns so Wh is stored with dense 128-lane vst.
        w_all = jnp.pad(w_all, ((0, 0), (0, hf_pad - hf)))

    # Row tiling: grid over row tiles; pad N so the grid divides evenly.
    tq_eff = min(tq, _round_up(N, 8))
    n_pad = _round_up(N, tq_eff)
    if n_pad != N:
        h = jnp.pad(h, ((0, n_pad - N), (0, 0)))
        adj_i8 = jnp.pad(adj_i8, ((0, n_pad - N), (0, n_pad - N)))
    num_tiles = n_pad // tq_eff

    # ---- Kernel A: projection (Wh, f_src, f_dst), once per node row tile ----
    proj_kernel = functools.partial(_gat_proj_kernel, use_bf16=use_bf16_mxu)
    wh, fsrc, fdst = pl.pallas_call(
        proj_kernel,
        out_shape=(jax.ShapeDtypeStruct((n_pad, hf_pad), jnp.float32),
                   jax.ShapeDtypeStruct((n_pad, H), jnp.float32),
                   jax.ShapeDtypeStruct((n_pad, H), jnp.float32)),
        grid=(num_tiles,),
        in_specs=[
            pl.BlockSpec((tq_eff, f_in), lambda i: (i, 0)),      # h row tile
            pl.BlockSpec((f_in, hf_pad), lambda i: (0, 0)),      # W, all heads (padded)
            pl.BlockSpec((f_in, H), lambda i: (0, 0)),           # folded W @ a_src
            pl.BlockSpec((f_in, H), lambda i: (0, 0)),           # folded W @ a_dst
        ],
        out_specs=(pl.BlockSpec((tq_eff, hf_pad), lambda i: (i, 0)),
                   pl.BlockSpec((tq_eff, H), lambda i: (i, 0)),
                   pl.BlockSpec((tq_eff, H), lambda i: (i, 0))),
        compiler_params=pltpu.CompilerParams(
            dimension_semantics=("parallel",)),
    )(h, w_all, wa_src, wa_dst)

    # ---- Kernel B: attention softmax + aggregation, per query-row tile ----
    attn_kernel = functools.partial(
        _gat_attn_kernel, alpha=float(alpha), apply_elu=apply_elu, f_out=f_out,
        n_heads=H, hf_pad=hf_pad, use_bf16=use_bf16_mxu)
    out = pl.pallas_call(
        attn_kernel,
        out_shape=jax.ShapeDtypeStruct((n_pad, hf_pad), jnp.float32),
        grid=(num_tiles,),
        in_specs=[
            pl.BlockSpec((tq_eff, n_pad), lambda i: (i, 0)),     # adj row tile (int8)
            pl.BlockSpec((n_pad, hf_pad), lambda i: (0, 0)),     # Wh (full, resident)
            pl.BlockSpec((tq_eff, H), lambda i: (i, 0)),         # f_src row tile
            pl.BlockSpec((n_pad, H), lambda i: (0, 0)),          # f_dst (full, resident)
        ],
        out_specs=pl.BlockSpec((tq_eff, hf_pad), lambda i: (i, 0)),
        compiler_params=pltpu.CompilerParams(
            dimension_semantics=("parallel",)),                  # v7x: split rows over 2 TCs
    )(adj_i8, wh, fsrc, fdst)

    return out[:N, :hf]


def xavier_uniform(key, shape, gain=1.414):
    fan_in, fan_out = shape[0], shape[1]
    bound = gain * (6.0 / (fan_in + fan_out)) ** 0.5
    return jax.random.uniform(key, shape, jnp.float32, -bound, bound)


def init_gat_params(key, feat_dim, hidden_dim1, hidden_dim2, nheads):
    keys = jax.random.split(key, 2 * nheads + 2)
    heads = []
    for i in range(nheads):
        W = xavier_uniform(keys[2 * i], (feat_dim, hidden_dim1))
        a = xavier_uniform(keys[2 * i + 1], (2 * hidden_dim1, 1))
        heads.append((W, a))
    W_out = xavier_uniform(keys[-2], (hidden_dim1 * nheads, hidden_dim2))
    a_out = xavier_uniform(keys[-1], (2 * hidden_dim2, 1))
    return {"heads": heads, "out": (W_out, a_out)}


def gat_forward(params, x, adj, *, alpha):
    # F.dropout(...) -> identity in eval mode (omitted).
    adj_i8 = (adj > 0).astype(jnp.int8)        # int8 adjacency: 4x less HBM/VMEM

    # torch.cat([att(x, adj) for att in attentions], dim=1): all heads fused
    # (concat=True heads -> ELU inside the kernel epilogue).
    W_stack = jnp.stack([W for (W, _) in params["heads"]], axis=0)        # (H, F_in, F1)
    a_stack = jnp.stack([a[:, 0] for (_, a) in params["heads"]], axis=0)  # (H, 2*F1)
    x_cat = gat_layer_fused(x, adj_i8, W_stack, a_stack,
                            alpha=alpha, apply_elu=True)

    # out_att has concat=False (no internal ELU); GAT.forward then applies
    # F.elu on top, so that ELU is fused into this kernel's epilogue.
    W_o, a_o = params["out"]
    return gat_layer_fused(x_cat, adj_i8, W_o[None], a_o[:, 0][None],
                           alpha=alpha, apply_elu=True)


if __name__ == "__main__":
    # Small shapes consistent with GAT(feat_dim, hidden_dim1, hidden_dim2, ...)
    N = 8            # number of graph nodes
    feat_dim = 16
    hidden_dim1 = 8
    hidden_dim2 = 8
    nheads = 2
    alpha = 0.2      # LeakyReLU negative slope
    dropout = 0.5    # unused in eval mode

    key = jax.random.PRNGKey(0)
    k_x, k_adj, k_params = jax.random.split(key, 3)

    x = jax.random.normal(k_x, (N, feat_dim), dtype=jnp.float32)
    adj = (jax.random.bernoulli(k_adj, 0.4, (N, N))).astype(jnp.float32)
    adj = jnp.maximum(adj, jnp.eye(N, dtype=jnp.float32))  # ensure self-loops

    params = init_gat_params(k_params, feat_dim, hidden_dim1, hidden_dim2, nheads)

    embeddings = gat_forward(params, x, adj, alpha=alpha)
    jax.block_until_ready(embeddings)
    assert embeddings.shape == (N, hidden_dim2)
    assert jnp.all(jnp.isfinite(embeddings))
    print("KERNEL_OK")
</pallas_src>

<mosaic_0001>
module attributes {stable_mosaic.version = 11 : i64} {
  func.func @_gat_proj_kernel(%arg0: i32, %arg1: memref<8x16xf32, #tpu.memory_space<vmem>>, %arg2: memref<16x128xf32, #tpu.memory_space<vmem>>, %arg3: memref<16x2xf32, #tpu.memory_space<vmem>>, %arg4: memref<16x2xf32, #tpu.memory_space<vmem>>, %arg5: memref<8x128xf32, #tpu.memory_space<vmem>>, %arg6: memref<8x2xf32, #tpu.memory_space<vmem>>, %arg7: memref<8x2xf32, #tpu.memory_space<vmem>>) attributes {dimension_semantics = [#tpu.dimension_semantics<parallel>], iteration_bounds = array<i64: 1>, scalar_prefetch = 0 : i64, scratch_operands = 0 : i64, tpu.core_type = #tpu.core_type<tc>, window_params = [{transform_indices = @transform_0, window_bounds = array<i64: 8, 16>}, {pipeline_mode = #tpu.pipeline_mode<synchronous>, transform_indices = @transform_1, window_bounds = array<i64: 16, 128>}, {pipeline_mode = #tpu.pipeline_mode<synchronous>, transform_indices = @transform_2, window_bounds = array<i64: 16, 2>}, {pipeline_mode = #tpu.pipeline_mode<synchronous>, transform_indices = @transform_3, window_bounds = array<i64: 16, 2>}, {transform_indices = @transform_4, window_bounds = array<i64: 8, 128>}, {transform_indices = @transform_5, window_bounds = array<i64: 8, 2>}, {transform_indices = @transform_6, window_bounds = array<i64: 8, 2>}]} {
    %c0 = arith.constant 0 : index
    %c0_0 = arith.constant 0 : index
    %0 = vector.load %arg1[%c0, %c0_0] : memref<8x16xf32, #tpu.memory_space<vmem>>, vector<8x16xf32>
    %c0_1 = arith.constant 0 : index
    %c0_2 = arith.constant 0 : index
    %1 = vector.load %arg2[%c0_1, %c0_2] : memref<16x128xf32, #tpu.memory_space<vmem>>, vector<16x128xf32>
    %cst = arith.constant dense<0.000000e+00> : vector<8x128xf32>
    %2 = tpu.matmul %0, %1, %cst {dimension_numbers = #tpu.dot_dimension_numbers<[1], [0], [0], [1], [0, 0, 1, 1], [], []>} : vector<8x16xf32>, vector<16x128xf32>, vector<8x128xf32> -> vector<8x128xf32>
    %c0_3 = arith.constant 0 : index
    %c0_4 = arith.constant 0 : index
    %3 = vector.load %arg5[%c0_3, %c0_4] : memref<8x128xf32, #tpu.memory_space<vmem>>, vector<8x128xf32>
    tpu.vector_store %arg5[%c0_3, %c0_4], %2 {strides = array<i32>} : memref<8x128xf32, #tpu.memory_space<vmem>>, vector<8x128xf32>,
    %c0_5 = arith.constant 0 : index
    %c0_6 = arith.constant 0 : index
    %4 = vector.load %arg3[%c0_5, %c0_6] : memref<16x2xf32, #tpu.memory_space<vmem>>, vector<16x2xf32>
    %cst_7 = arith.constant dense<0.000000e+00> : vector<8x2xf32>
    %5 = tpu.matmul %0, %4, %cst_7 {dimension_numbers = #tpu.dot_dimension_numbers<[1], [0], [0], [1], [0, 0, 1, 1], [], []>} : vector<8x16xf32>, vector<16x2xf32>, vector<8x2xf32> -> vector<8x2xf32>
    %c0_8 = arith.constant 0 : index
    %c0_9 = arith.constant 0 : index
    %6 = vector.load %arg6[%c0_8, %c0_9] : memref<8x2xf32, #tpu.memory_space<vmem>>, vector<8x2xf32>
    tpu.vector_store %arg6[%c0_8, %c0_9], %5 {strides = array<i32>} : memref<8x2xf32, #tpu.memory_space<vmem>>, vector<8x2xf32>,
    %c0_10 = arith.constant 0 : index
    %c0_11 = arith.constant 0 : index
    %7 = vector.load %arg4[%c0_10, %c0_11] : memref<16x2xf32, #tpu.memory_space<vmem>>, vector<16x2xf32>
    %cst_12 = arith.constant dense<0.000000e+00> : vector<8x2xf32>
    %8 = tpu.matmul %0, %7, %cst_12 {dimension_numbers = #tpu.dot_dimension_numbers<[1], [0], [0], [1], [0, 0, 1, 1], [], []>} : vector<8x16xf32>, vector<16x2xf32>, vector<8x2xf32> -> vector<8x2xf32>
    %c0_13 = arith.constant 0 : index
    %c0_14 = arith.constant 0 : index
    %9 = vector.load %arg7[%c0_13, %c0_14] : memref<8x2xf32, #tpu.memory_space<vmem>>, vector<8x2xf32>
    tpu.vector_store %arg7[%c0_13, %c0_14], %8 {strides = array<i32>} : memref<8x2xf32, #tpu.memory_space<vmem>>, vector<8x2xf32>,
    return
  }
  func.func @transform_0(%arg0: i32) -> (i32, i32) {
    %c0_i32 = arith.constant 0 : i32
    %c0_i32_0 = arith.constant 0 : i32
    return %arg0, %c0_i32 : i32, i32
  }
  func.func @transform_1(%arg0: i32) -> (i32, i32) {
    %c0_i32 = arith.constant 0 : i32
    %c0_i32_0 = arith.constant 0 : i32
    %c0_i32_1 = arith.constant 0 : i32
    return %c0_i32, %c0_i32_0 : i32, i32
  }
  func.func @transform_2(%arg0: i32) -> (i32, i32) {
    %c0_i32 = arith.constant 0 : i32
    %c0_i32_0 = arith.constant 0 : i32
    %c0_i32_1 = arith.constant 0 : i32
    return %c0_i32, %c0_i32_0 : i32, i32
  }
  func.func @transform_3(%arg0: i32) -> (i32, i32) {
    %c0_i32 = arith.constant 0 : i32
    %c0_i32_0 = arith.constant 0 : i32
    %c0_i32_1 = arith.constant 0 : i32
    return %c0_i32, %c0_i32_0 : i32, i32
  }
  func.func @transform_4(%arg0: i32) -> (i32, i32) {
    %c0_i32 = arith.constant 0 : i32
    %c0_i32_0 = arith.constant 0 : i32
    return %arg0, %c0_i32 : i32, i32
  }
  func.func @transform_5(%arg0: i32) -> (i32, i32) {
    %c0_i32 = arith.constant 0 : i32
    %c0_i32_0 = arith.constant 0 : i32
    return %arg0, %c0_i32 : i32, i32
  }
  func.func @transform_6(%arg0: i32) -> (i32, i32) {
    %c0_i32 = arith.constant 0 : i32
    %c0_i32_0 = arith.constant 0 : i32
    return %arg0, %c0_i32 : i32, i32
  }
}

</mosaic_0001>

<bundles_post_ra>
// kernel: tpu_custom_call.1
= control target key start
LH: loop header
LB: loop body
LE: loop exit
PB: predicated region body
PF: predicated region fallthrough
CT: control target
= control target key end

     0   :  { %v338_v2 = vmov 0.0|0.0   ;;  %vm339_vm0 = vmmov 0   ;;  %v340_v4 = vmov 0.0   ;;  %s421_s0 = inlined_call_operand.vmem [shape: f32[8,16], index: 0, kind: input, shape index: {}]   ;;  %s422_s1 = inlined_call_operand.vmem [shape: f32[16,128], index: 1, kind: input, shape index: {}]   ;;  %s423_s2 = inlined_call_operand.vmem [shape: f32[16,2], index: 2, kind: input, shape index: {}]   ;;  %s424_s3 = inlined_call_operand.vmem [shape: f32[16,2], index: 3, kind: input, shape index: {}]   ;;  %s425_s4 = inlined_call_operand.hbm [shape: f32[8,128], index: 4, kind: output, shape index: {0}]   ;;  %s426_s5 = inlined_call_operand.vmem [shape: f32[8,2], index: 5, kind: output, shape index: {1}]   ;;  %s427_s6 = inlined_call_operand.vmem [shape: f32[8,2], index: 6, kind: output, shape index: {2}]  }
   0x1   :  { %v22_v0 = vld [vmem:[%s422_s1] sm:$0xff]  ;;  %v23_v1 = vld [vmem:[%s422_s1 + $0x8] sm:$0xff]  ;;  %301 = vmatprep.subr.bf16.mxu0 %v338_v2  ;;  %284 = vmatprep.mubr.msk.f32.mxu0 %vm339_vm0, %v340_v4 }
   0x2   :  { %v302_v3 = vpack.c.bf16 %v23_v1, %v22_v0  ;;  %v99_v5 = vld [vmem:[%s423_s2] sm:$0xff]  ;;  %v100_v6 = vld [vmem:[%s423_s2 + $0x8] sm:$0xff]  ;;  %304 = vmatprep.subr.bf16.mxu1 %v338_v2  ;;  %291 = vmatprep.mubr.msk.f32.mxu1 %vm339_vm0, %v340_v4 }
   0x3   :  { %v173_v7 = vld [vmem:[%s424_s3] sm:$0xff]  ;;  %v305_v8 = vpack.c.bf16 %v100_v6, %v99_v5  ;;  %v174_v9 = vld [vmem:[%s424_s3 + $0x8] sm:$0xff] }
   0x4   :  { %12 = vsyncpa [#allocation3], 0  ;;  %303 = vmatpush3.bf16.msra.mxu0 %v302_v3  ;;  %v21_v10 = vld [vmem:[%s421_s0] sm:$0xff]  ;;  %vm24_vm1 = vcmask 130048   ;;  %v308_v11 = vpack.c.bf16 %v174_v9, %v173_v7  ;;  %s341_s2 = smov [#allocation2]   ;;  %vm171_vm2 = vcmask 15360  }
   0x5   :  { %307 = vmatprep.subr.bf16.mxu0 %v338_v2  ;;  %306 = vmatpush3.bf16.msra.mxu1 %v305_v8  ;;  %s252_s3 = sshll.u32 %s341_s2, 4  ;;  %s253_s3 = int_to_ptr.vmem [resolvable:$true] %s252_s3 }
   0x6   :  { %s314_s10 = scalar_lea.vmem %s253_s3, 128  ;;  %p319_p1 = scmp.lt.s32.totalorder %s253_s3, %s253_s3 }
   0x7   :  { %285 = vmatmul.mubr.msk.f32.vlgmr.msra.gmra.mrb[0].mxu0 %vm24_vm1, %v21_v10  ;;  %p315_p0 = scmp.ne.s32.totalorder %s253_s3, %s314_s10  ;;  %p320_p2 = scmp.lt.s32.totalorder %s314_s10, %s314_s10 }
   0x8   :  { %309 = vmatpush3.bf16.msra.mxu0 %v308_v11  ;;  %298 = vmatprep.mubr.msk.f32.mxu0 %vm339_vm0, %v340_v4 }
   0x9   :  { %292 = vmatmul.mubr.msk.f32.vlgmr.msra.gmra.mrb[0].mxu1 %vm24_vm1, %v21_v10  ;;  %p321_p3 = por %p320_p2, %p319_p1 }
   0xb   :  { %299 = vmatmul.mubr.msk.f32.vlgmr.msra.gmra.mrb[2].mxu0 %vm24_vm1, %v21_v10  ;;  %p322_p4 = pnand %p321_p3, %p315_p0 }
  0xda   :  { %v94_v12 = vpop.f32.mrb[0].mxu0 }
  0xdb   :  { %98 = vst [vmem:[#allocation2] sm:$0xff] %v94_v12  ;;  %v286_v13 = vpop.f32.mrb[1].mxu0 }
  0xdc   :  { %v167_v14 = vpop.f32.mrb[0].mxu1 }
  0xdd   :  { %325 = shalt.err (!%p322_p4)
}
  0xde   :  { %s326_s12 = scalar_lea.hbm %s425_s4, 128 }
  0xdf   :  { %p327_p5 = scmp.ne.s32.totalorder %s425_s4, %s326_s12  ;;  %p330_p6 = scmp.lt.u32.totalorder %s326_s12, %s425_s4 }
  0xe1   :  { %p332_p7 = pnand %p330_p6, %p327_p5 }
  0xe3   :  { %335 = shalt.err (!%p332_p7)
}
  0xe4   :  { %255 = dma.vmem_to_hbm [thread:$0]  %s253_s3, 128, %s425_s4, [#allocation3]   ;;  %172 = vst.msk [vmem:[%s426_s5] sm:$0xff] %vm171_vm2, %v167_v14  ;;  %v293_v15 = vpop.f32.mrb[1].mxu1  ;;  %v241_v16 = vpop.f32.mrb[2].mxu0 }
  0xe5   :  { %245 = vst.msk [vmem:[%s427_s6] sm:$0xff] %vm171_vm2, %v241_v16  ;;  %v300_v17 = vpop.f32.mrb[3].mxu0 }
  0xe6   :  { %336 = dma.done.wait [#allocation3], 128  }
  0xe7   :  { %337 = vsyncadd [#allocation3], 4294967168 }
  0xe8   :  { %267 = vsyncpa [#allocation3], 1 }

</bundles_post_ra>
